<compile_context>
chip_gen: v6e
topology: v6e:2x2x1
jax: 0.10.0
libtpu: 0.0.40
codegen_flags: <defaults>
</compile_context>

<pallas_src>
import math
import functools

import jax
import jax.numpy as jnp
from jax.experimental import pallas as pl
from jax.experimental.pallas import tpu as pltpu


def _rnn_attention_kernel(q_ref, k_ref, v_ref, out_ref, w_ref, *, scale):
    # q_ref: (BB, Q)   k_ref: (BB, T, Q)   v_ref: (BB, T, V)
    # out_ref: (BB, V) w_ref: (BB, T)

    # Fold the 1/sqrt(Q) scale into q (scales Q elements per row, not T).
    q = q_ref[...].astype(jnp.float32) * scale              # (BB, Q) f32
    k = k_ref[...]                                          # (BB, T, Q) native dtype
    v = v_ref[...]                                          # (BB, T, V) native dtype

    # scores[b, t] = sum_q q[b, q] * k[b, t, q]   (contract over lane axis Q)
    scores = jnp.sum(q[:, None, :] * k, axis=-1)            # (BB, T) f32

    # Numerically stable softmax over the sequence axis (dim=2 in PyTorch).
    m = jnp.max(scores, axis=-1, keepdims=True)
    e = jnp.exp(scores - m)
    w = e * pl.reciprocal(jnp.sum(e, axis=-1, keepdims=True), approx=False)

    # out[b, v] = sum_t w[b, t] * value[b, t, v]  (contract over sublane axis T)
    out = jnp.sum(w[:, :, None] * v, axis=1)                # (BB, V) f32

    out_ref[...] = out.astype(out_ref.dtype)
    w_ref[...] = w.astype(w_ref.dtype)


def _choose_block_batch(B, T, Q, V, itemsize, vmem_budget_bytes=8 * 1024 * 1024):
    """How many batch rows to process per grid step.

    The op is HBM-bound, so the goal is large, double-buffered DMAs: take as
    many batch rows as fit a conservative VMEM budget. The per-row cost counts
    the double-buffered k/v input tiles AND the single-buffered f32
    broadcast-product intermediates the kernel materializes. The budget fits
    v5e/v6e scoped defaults and stays well under v7x's 64 MiB physical VMEM.
    """
    bytes_per_row = (
        2 * T * (Q + V) * itemsize   # Pallas double-buffered k/v tiles
        + T * (Q + V) * 4            # f32 product intermediates in the kernel
    )
    bb = int(max(1, vmem_budget_bytes // max(bytes_per_row, 1)))
    if bb >= B:
        bb = B
        # v7x has 2 TensorCores sharing HBM: if everything fits in one block
        # but there is enough work, split it so the "parallel" grid axis feeds
        # both cores.
        if B >= 16 and (B // 2) % 8 == 0:
            bb = B // 2
        return bb
    # Keep the second-minor dim of the 2-D blocks sublane-aligned (multiple of
    # 8); Pallas masks the ragged last block when bb does not divide B.
    bb = max(8, (bb // 8) * 8)
    return min(bb, B)


def rnn_attention(query, key, value, *, block_batch=None):
    """query: [B, Q], key: [B, T, Q], value: [B, T, V] -> ([B, V], [B, T])."""
    B, Q = query.shape
    _, T, _ = key.shape
    V = value.shape[-1]
    scale = 1.0 / math.sqrt(Q)

    itemsize = max(query.dtype.itemsize, key.dtype.itemsize, value.dtype.itemsize)
    bb = block_batch if block_batch is not None else _choose_block_batch(
        B, T, Q, V, itemsize)
    num_blocks = pl.cdiv(B, bb)

    kernel = functools.partial(_rnn_attention_kernel, scale=scale)

    # TODO(synk): a single batch row with very large T*(Q+V) (beyond VMEM)
    # would need a T-blocked two-pass / online-softmax variant; not needed for
    # the shapes this module targets.
    out, w = pl.pallas_call(
        kernel,
        out_shape=(
            jax.ShapeDtypeStruct((B, V), query.dtype),
            jax.ShapeDtypeStruct((B, T), query.dtype),
        ),
        grid_spec=pltpu.PrefetchScalarGridSpec(
            num_scalar_prefetch=0,
            grid=(num_blocks,),
            in_specs=[
                pl.BlockSpec((bb, Q), lambda b: (b, 0)),
                pl.BlockSpec((bb, T, Q), lambda b: (b, 0, 0)),
                pl.BlockSpec((bb, T, V), lambda b: (b, 0, 0)),
            ],
            out_specs=[
                pl.BlockSpec((bb, V), lambda b: (b, 0)),
                pl.BlockSpec((bb, T), lambda b: (b, 0)),
            ],
        ),
        compiler_params=pltpu.CompilerParams(
            dimension_semantics=("parallel",),
            vmem_limit_bytes=32 * 1024 * 1024,
        ),
    )(query, key, value)
    return out, w


def _reference(query, key, value):
    scale = 1.0 / math.sqrt(query.shape[-1])
    scores = jnp.einsum("bq,btq->bt", query, key,
                        precision=jax.lax.Precision.HIGHEST) * scale
    w = jax.nn.softmax(scores, axis=-1)
    out = jnp.einsum("bt,btv->bv", w, value,
                     precision=jax.lax.Precision.HIGHEST)
    return out, w


if __name__ == "__main__":
    # Small case, matching the module's natural shapes.
    B, T, Q, V = 2, 8, 32, 32
    k0, k1, k2 = jax.random.split(jax.random.PRNGKey(0), 3)
    query = jax.random.normal(k0, (B, Q), dtype=jnp.float32)
    key = jax.random.normal(k1, (B, T, Q), dtype=jnp.float32)
    value = jax.random.normal(k2, (B, T, V), dtype=jnp.float32)

    out, w = rnn_attention(query, key, value)
    jax.block_until_ready((out, w))

    out_ref, w_ref = _reference(query, key, value)
    assert out.shape == (B, V) and w.shape == (B, T)
    assert jnp.allclose(out, out_ref, atol=1e-5, rtol=1e-5)
    assert jnp.allclose(w, w_ref, atol=1e-5, rtol=1e-5)

    # Larger case exercising the batch-blocked, multi-step grid with
    # lane-dense (128-wide) output blocks.
    B2, T2, Q2, V2 = 16, 128, 128, 128
    k3, k4, k5 = jax.random.split(jax.random.PRNGKey(1), 3)
    q2 = jax.random.normal(k3, (B2, Q2), dtype=jnp.float32)
    key2 = jax.random.normal(k4, (B2, T2, Q2), dtype=jnp.float32)
    val2 = jax.random.normal(k5, (B2, T2, V2), dtype=jnp.float32)

    out2, w2 = rnn_attention(q2, key2, val2)
    jax.block_until_ready((out2, w2))

    out2_ref, w2_ref = _reference(q2, key2, val2)
    assert out2.shape == (B2, V2) and w2.shape == (B2, T2)
    assert jnp.allclose(out2, out2_ref, atol=1e-4, rtol=1e-4)
    assert jnp.allclose(w2, w2_ref, atol=1e-5, rtol=1e-5)

    print("KERNEL_OK")
</pallas_src>

<mosaic_0001>
module attributes {stable_mosaic.version = 11 : i64} {
  func.func @_rnn_attention_kernel(%arg0: i32, %arg1: memref<2x32xf32, #tpu.memory_space<vmem>>, %arg2: memref<2x8x32xf32, #tpu.memory_space<vmem>>, %arg3: memref<2x8x32xf32, #tpu.memory_space<vmem>>, %arg4: memref<2x32xf32, #tpu.memory_space<vmem>>, %arg5: memref<2x8xf32, #tpu.memory_space<vmem>>) attributes {dimension_semantics = [#tpu.dimension_semantics<parallel>], iteration_bounds = array<i64: 1>, scalar_prefetch = 0 : i64, scratch_operands = 0 : i64, tpu.core_type = #tpu.core_type<tc>, window_params = [{transform_indices = @transform_0, window_bounds = array<i64: 2, 32>}, {transform_indices = @transform_1, window_bounds = array<i64: 2, 8, 32>}, {transform_indices = @transform_2, window_bounds = array<i64: 2, 8, 32>}, {transform_indices = @transform_3, window_bounds = array<i64: 2, 32>}, {transform_indices = @transform_4, window_bounds = array<i64: 2, 8>}]} {
    %c0 = arith.constant 0 : index
    %c0_0 = arith.constant 0 : index
    %0 = vector.load %arg1[%c0, %c0_0] : memref<2x32xf32, #tpu.memory_space<vmem>>, vector<2x32xf32>
    %cst = arith.constant 0.176776692 : f32
    %1 = vector.broadcast %cst : f32 to vector<2x32xf32>
    %2 = arith.mulf %0, %1 : vector<2x32xf32>
    %c0_1 = arith.constant 0 : index
    %c0_2 = arith.constant 0 : index
    %c0_3 = arith.constant 0 : index
    %3 = vector.load %arg2[%c0_1, %c0_2, %c0_3] : memref<2x8x32xf32, #tpu.memory_space<vmem>>, vector<2x8x32xf32>
    %c0_4 = arith.constant 0 : index
    %c0_5 = arith.constant 0 : index
    %c0_6 = arith.constant 0 : index
    %4 = vector.load %arg3[%c0_4, %c0_5, %c0_6] : memref<2x8x32xf32, #tpu.memory_space<vmem>>, vector<2x8x32xf32>
    %5 = vector.shape_cast %2 : vector<2x32xf32> to vector<2x1x32xf32>
    %6 = vector.broadcast %5 : vector<2x1x32xf32> to vector<2x8x32xf32>
    %7 = arith.mulf %6, %3 : vector<2x8x32xf32>
    %cst_7 = arith.constant dense<0.000000e+00> : vector<2x8xf32>
    %8 = vector.multi_reduction <add>, %7, %cst_7 [2] : vector<2x8x32xf32> to vector<2x8xf32>
    %cst_8 = arith.constant dense<0xFF800000> : vector<2xf32>
    %9 = vector.multi_reduction <maximumf>, %8, %cst_8 [1] : vector<2x8xf32> to vector<2xf32>
    %10 = vector.shape_cast %9 : vector<2xf32> to vector<2x1xf32>
    %11 = vector.broadcast %10 : vector<2x1xf32> to vector<2x8xf32>
    %12 = arith.subf %8, %11 : vector<2x8xf32>
    %13 = math.exp %12 : vector<2x8xf32>
    %cst_9 = arith.constant dense<0.000000e+00> : vector<2xf32>
    %14 = vector.multi_reduction <add>, %13, %cst_9 [1] : vector<2x8xf32> to vector<2xf32>
    %15 = vector.shape_cast %14 : vector<2xf32> to vector<2x1xf32>
    %16 = tpu.reciprocal %15 : vector<2x1xf32> -> vector<2x1xf32>
    %17 = vector.broadcast %16 : vector<2x1xf32> to vector<2x8xf32>
    %18 = arith.mulf %13, %17 : vector<2x8xf32>
    %19 = vector.shape_cast %18 : vector<2x8xf32> to vector<2x8x1xf32>
    %20 = vector.broadcast %19 : vector<2x8x1xf32> to vector<2x8x32xf32>
    %21 = arith.mulf %20, %4 : vector<2x8x32xf32>
    %cst_10 = arith.constant dense<0.000000e+00> : vector<2x32xf32>
    %22 = vector.multi_reduction <add>, %21, %cst_10 [1] : vector<2x8x32xf32> to vector<2x32xf32>
    %c0_11 = arith.constant 0 : index
    %c0_12 = arith.constant 0 : index
    %23 = vector.load %arg4[%c0_11, %c0_12] : memref<2x32xf32, #tpu.memory_space<vmem>>, vector<2x32xf32>
    tpu.vector_store %arg4[%c0_11, %c0_12], %22 {strides = array<i32>} : memref<2x32xf32, #tpu.memory_space<vmem>>, vector<2x32xf32>,
    %c0_13 = arith.constant 0 : index
    %c0_14 = arith.constant 0 : index
    %24 = vector.load %arg5[%c0_13, %c0_14] : memref<2x8xf32, #tpu.memory_space<vmem>>, vector<2x8xf32>
    tpu.vector_store %arg5[%c0_13, %c0_14], %18 {strides = array<i32>} : memref<2x8xf32, #tpu.memory_space<vmem>>, vector<2x8xf32>,
    return
  }
  func.func @transform_0(%arg0: i32) -> (i32, i32) {
    %c0_i32 = arith.constant 0 : i32
    %c0_i32_0 = arith.constant 0 : i32
    return %arg0, %c0_i32 : i32, i32
  }
  func.func @transform_1(%arg0: i32) -> (i32, i32, i32) {
    %c0_i32 = arith.constant 0 : i32
    %c0_i32_0 = arith.constant 0 : i32
    %c0_i32_1 = arith.constant 0 : i32
    return %arg0, %c0_i32, %c0_i32_0 : i32, i32, i32
  }
  func.func @transform_2(%arg0: i32) -> (i32, i32, i32) {
    %c0_i32 = arith.constant 0 : i32
    %c0_i32_0 = arith.constant 0 : i32
    %c0_i32_1 = arith.constant 0 : i32
    return %arg0, %c0_i32, %c0_i32_0 : i32, i32, i32
  }
  func.func @transform_3(%arg0: i32) -> (i32, i32) {
    %c0_i32 = arith.constant 0 : i32
    %c0_i32_0 = arith.constant 0 : i32
    return %arg0, %c0_i32 : i32, i32
  }
  func.func @transform_4(%arg0: i32) -> (i32, i32) {
    %c0_i32 = arith.constant 0 : i32
    %c0_i32_0 = arith.constant 0 : i32
    return %arg0, %c0_i32 : i32, i32
  }
}

</mosaic_0001>

<bundles_post_ra>
// kernel: tpu_custom_call.1
= control target key start
LH: loop header
LB: loop body
LE: loop exit
PB: predicated region body
PF: predicated region fallthrough
CT: control target
= control target key end

     0   :  { %10 = vsyncpa [#allocation3], 0  ;;  %s442_s0 = inlined_call_operand.hbm [shape: f32[2,32], index: 0, kind: input, shape index: {}]   ;;  %s443_s1 = inlined_call_operand.hbm [shape: f32[2,8,32], index: 1, kind: input, shape index: {}]   ;;  %s444_s2 = inlined_call_operand.hbm [shape: f32[2,8,32], index: 2, kind: input, shape index: {}]   ;;  %s445_s3 = inlined_call_operand.hbm [shape: f32[2,32], index: 3, kind: output, shape index: {0}]   ;;  %s446_s4 = inlined_call_operand.hbm [shape: f32[2,8], index: 4, kind: output, shape index: {1}]  }
   0x1   :  { %11 = vsyncpa [#allocation6], 0 }
   0x2   :  { %12 = vsyncpa [#allocation4], 0 }
   0x3   :  { %13 = vsyncpa [#allocation10], 0  ;;  %s374_s15 = smov [#allocation5]  }
   0x4   :  { %s29_s16 = sshll.u32 %s374_s15, 4  ;;  %s30_s16 = int_to_ptr.vmem [resolvable:$true] %s29_s16 }
   0x5   :  { %s274_s17 = scalar_lea.vmem %s30_s16, 256  ;;  %p279_p1 = scmp.lt.s32.totalorder %s30_s16, %s30_s16 }
   0x6   :  { %p275_p0 = scmp.ne.s32.totalorder %s30_s16, %s274_s17  ;;  %p280_p2 = scmp.lt.s32.totalorder %s274_s17, %s274_s17 }
   0x8   :  { %p281_p3 = por %p280_p2, %p279_p1 }
   0xa   :  { %p282_p4 = pnand %p281_p3, %p275_p0 }
   0xc   :  { %285 = shalt.err (!%p282_p4)
}
   0xd   :  { %s375_s18 = smov 128   ;;  %s376_s19 = smov 8  }
   0xe   :  { %35 = dma.hbm_to_vmem [thread:$0]  %s443_s1, 256, %s30_s16, [#allocation6], %s375_s18, %s375_s18, %s376_s19  }
   0xf   :  { %s377_s22 = smov [#allocation2]   ;;  %s378_s24 = smov [#allocation7]  }
  0x10   :  { %s20_s23 = sshll.u32 %s377_s22, 4  ;;  %s41_s25 = sshll.u32 %s378_s24, 4  ;;  %s21_s23 = int_to_ptr.vmem [resolvable:$true] %s20_s23  ;;  %s42_s25 = int_to_ptr.vmem [resolvable:$true] %s41_s25 }
  0x11   :  { %s294_s26 = scalar_lea.vmem %s21_s23, 32  ;;  %p299_p6 = scmp.lt.s32.totalorder %s21_s23, %s21_s23 }
  0x12   :  { %p295_p5 = scmp.ne.s32.totalorder %s21_s23, %s294_s26  ;;  %p300_p7 = scmp.lt.s32.totalorder %s294_s26, %s294_s26 }
  0x14   :  { %p301_p8 = por %p300_p7, %p299_p6 }
  0x16   :  { %p302_p9 = pnand %p301_p8, %p295_p5 }
  0x18   :  { %305 = shalt.err (!%p302_p9)
}
  0x19   :  { %23 = dma.hbm_to_vmem [thread:$0]  %s442_s0, 32, %s21_s23, [#allocation3]  }
  0x1a   :  { %s314_s29 = scalar_lea.vmem %s42_s25, 256  ;;  %p319_p11 = scmp.lt.s32.totalorder %s42_s25, %s42_s25 }
  0x1b   :  { %p315_p10 = scmp.ne.s32.totalorder %s42_s25, %s314_s29  ;;  %p320_p12 = scmp.lt.s32.totalorder %s314_s29, %s314_s29 }
  0x1d   :  { %p321_p13 = por %p320_p12, %p319_p11 }
  0x1f   :  { %p322_p0 = pnand %p321_p13, %p315_p10 }
  0x21   :  { %325 = shalt.err (!%p322_p0)
}
  0x22   :  { %47 = dma.hbm_to_vmem [thread:$0]  %s444_s2, 256, %s42_s25, [#allocation6], %s375_s18, %s375_s18, %s376_s19  }
  0x23   :  { %366 = dma.done.wait [#allocation3], 32  }
  0x24   :  { %367 = vsyncadd [#allocation3], 4294967264 }
  0x25   :  { %368 = dma.done.wait [#allocation6], 512  }
  0x26   :  { %369 = vsyncadd [#allocation6], 4294966784  ;;  %v67_v0 = vlaneseq  ;;  %v379_v1 = vmov 1966171168   ;;  %v57_v8 = vld [vmem:[#allocation2] sm:$0x3] }
  0x27   :  { %v65_v2 = vunpack.c.l.s4 %v379_v1  ;;  %v58_v9 = vmul.f32 0.17677669, %v57_v8  ;;  %v59_v14 = vld [vmem:[#allocation5] sm:$0xff]  ;;  %vm98_vm0 = vcmask 261120   ;;  %v60_v17 = vld [vmem:[#allocation5 + $0x8] sm:$0xff]  ;;  %vm117_vm1 = vcmask 1041409  }
  0x28   :  { %v68_v3 = vshrl.u32 %v67_v0, 7  ;;  %v108_v4 = vand.u32 127, %v67_v0  ;;  %vm120_vm2 = vcmask 58368   ;;  %v380_v29 = vmov 0   ;;  %v61_v52 = vld [vmem:[#allocation7] sm:$0xff]  ;;  %v62_v55 = vld [vmem:[#allocation7 + $0x8] sm:$0xff] }
  0x29   :  { %v66_v5 = vunpack.c.0.s8 %v65_v2  ;;  %259 = vset.pattern.permute.xlu0 %v380_v29  ;;  %258 = vset.pattern.permute.xlu1 %v380_v29  ;;  %s381_s0 = smov [#allocation9]  }
  0x2a   :  { %v417_v6 = vsub.s32 %v108_v4, %v68_v3  ;;  %v88_v11 = vsub.s32 0, %v68_v3  ;;  %v131_v30 = vsub.s32 1, %v68_v3  ;;  %s235_s2 = sshll.u32 %s381_s0, 4  ;;  %s236_s2 = int_to_ptr.vmem [resolvable:$true] %s235_s2 }
  0x2b   :  { %v69_v7 = vsub.s32 %v66_v5, %v68_v3  ;;  %s326_s5 = scalar_lea.vmem %s236_s2, 32  ;;  %p331_p2 = scmp.lt.s32.totalorder %s236_s2, %s236_s2 }
  0x2c   :  { %p327_p1 = scmp.ne.s32.totalorder %s236_s2, %s326_s5  ;;  %p332_p3 = scmp.lt.s32.totalorder %s326_s5, %s326_s5 }
  0x2d   :  { %v70_v10 = vrot.slane %v58_v9, %v69_v7 }
  0x2e   :  { %p333_p4 = por %p332_p3, %p331_p2 }
  0x2f   :  { %v78_v12 = vrot.slane %v70_v10, %v69_v7  ;;  %v71_v13 = vcombine.high %v70_v10, %v70_v10 }
  0x30   :  { %p334_p5 = pnand %p333_p4, %p327_p1 }
  0x31   :  { %v89_v15 = vrot.slane %v78_v12, %v88_v11  ;;  %v85_v16 = vrot.slane %v71_v13, %v69_v7 }
  0x33   :  { %v96_v18 = vmul.f32 %v89_v15, %v59_v14  ;;  %v93_v19 = vrot.slane %v85_v16, %v88_v11 }
  0x35   :  { %v99_v20 = vsel %vm98_vm0, %v96_v18, 0.0  ;;  %v97_v21 = vmul.f32 %v93_v19, %v60_v17 }
  0x36   :  { %100 = vadd.xlane.f32.xlu0 %v99_v20 }
  0x37   :  { %v102_v22 = vsel %vm98_vm0, %v97_v21, 0.0 }
  0x3a   :  { %103 = vadd.xlane.f32.xlu0 %v102_v22 }
  0xbf   :  { %v101_v23 = vpop.xlane.xlu0 %100 }
  0xc0   :  { %v112_v25 = vrot.slane %v101_v23, %v417_v6 }
  0xc3   :  { %v104_v24 = vpop.xlane.xlu0 %103 }
  0xc4   :  { %v116_v26 = vrot.slane %v104_v24, %v417_v6 }
  0xc6   :  { %v118_v27 = vsel %vm117_vm1, %v116_v26, %v112_v25 }
  0xc7   :  { %v121_v28 = vsel %vm120_vm2, %v118_v27, -inf }
  0xc8   :  { %122 = vmax.xlane.f32.xlu1 %v121_v28 }
 0x151   :  { %v123_v31 = vpop.xlane.xlu1 %122 }
 0x152   :  { %v128_v32 = vrot.slane %v123_v31, %v88_v11  ;;  %v132_v33 = vrot.slane %v123_v31, %v131_v30 }
 0x154   :  { %v135_v34 = vsub.f32 %v101_v23, %v128_v32  ;;  %v136_v35 = vsub.f32 %v104_v24, %v132_v33 }
 0x156   :  { %v137_v36 = vmul.f32 1.442695, %v135_v34  ;;  %v139_v37 = vmul.f32 1.442695, %v136_v35 }
 0x158   :  { %260 = vpow2.f32 %v137_v36 }
 0x159   :  { %262 = vpow2.f32 %v139_v37 }
 0x165   :  { %v261_v38 = vpop.eup %260 }
 0x166   :  { %v263_v39 = vpop.eup %262  ;;  %144 = vperm.xlu1 %258, %v261_v38  }
 0x167   :  { %147 = vperm.xlu0 %259, %v263_v39  }
 0x1e1   :  { %v145_v40 = vpop.permute.xlu1 %144 }
 0x1e2   :  { %v148_v41 = vpop.permute.xlu0 %147  ;;  %v152_v42 = vrot.slane %v145_v40, %v417_v6 }
 0x1e3   :  { %v156_v43 = vrot.slane %v148_v41, %v417_v6 }
 0x1e5   :  { %v157_v44 = vsel %vm117_vm1, %v156_v43, %v152_v42 }
 0x1e6   :  { %v159_v45 = vsel %vm120_vm2, %v157_v44, 0.0 }
 0x1e7   :  { %160 = vadd.xlane.f32.xlu1 %v159_v45 }
 0x270   :  { %v161_v46 = vpop.xlane.xlu1 %160 }
 0x271   :  { %264 = vrcp.f32 %v161_v46 }
 0x27e   :  { %v265_v47 = vpop.eup %264 }
 0x27f   :  { %v167_v48 = vrot.slane %v265_v47, %v88_v11  ;;  %v171_v50 = vrot.slane %v265_v47, %v131_v30 }
 0x281   :  { %v174_v49 = vmul.f32 %v261_v38, %v167_v48  ;;  %v175_v51 = vmul.f32 %v263_v39, %v171_v50 }
 0x283   :  { %178 = vperm.xlu0 %259, %v174_v49  }
 0x287   :  { %183 = vperm.xlu0 %259, %v175_v51  }
 0x2fe   :  { %v179_v53 = vpop.permute.xlu0 %178 }
 0x2ff   :  { %v186_v54 = vmul.f32 %v179_v53, %v61_v52  ;;  %v211_v59 = vrot.slane %v179_v53, %v417_v6 }
 0x301   :  { %v188_v56 = vsel %vm98_vm0, %v186_v54, 0.0 }
 0x302   :  { %v189_v57 = vrot.slane %v188_v56, 4  ;;  %v184_v58 = vpop.permute.xlu0 %183 }
 0x303   :  { %v187_v60 = vmul.f32 %v184_v58, %v62_v55  ;;  %v215_v61 = vrot.slane %v184_v58, %v417_v6 }
 0x304   :  { %v190_v62 = vadd.f32 %v189_v57, %v188_v56 }
 0x305   :  { %v195_v63 = vsel %vm98_vm0, %v187_v60, 0.0  ;;  %v216_v0 = vsel %vm117_vm1, %v215_v61, %v211_v59 }
 0x306   :  { %v191_v1 = vrot.slane %v190_v62, 2  ;;  %v196_v2 = vrot.slane %v195_v63, 4  ;;  %218 = vst.msk [vmem:[#allocation9] sm:$0x3] %vm120_vm2, %v216_v0 }
 0x307   :  { %337 = shalt.err (!%p334_p5)
}
 0x308   :  { %238 = dma.vmem_to_hbm [thread:$0]  %s236_s2, 32, %s446_s4, [#allocation10]   ;;  %v192_v3 = vadd.f32 %v191_v1, %v190_v62  ;;  %v197_v4 = vadd.f32 %v196_v2, %v195_v63  ;;  %vm206_vm3 = vcmask 254976  }
 0x309   :  { %s382_s8 = smov [#allocation8]  }
 0x30a   :  { %v198_v5 = vrot.slane %v197_v4, 2  ;;  %v193_v6 = vrot.slane %v192_v3, 1  ;;  %s225_s9 = sshll.u32 %s382_s8, 4  ;;  %s226_s9 = int_to_ptr.vmem [resolvable:$true] %s225_s9 }
 0x30b   :  { %s346_s10 = scalar_lea.vmem %s226_s9, 32  ;;  %p351_p7 = scmp.lt.s32.totalorder %s226_s9, %s226_s9 }
 0x30c   :  { %v199_v7 = vadd.f32 %v198_v5, %v197_v4  ;;  %v194_v10 = vadd.f32 %v193_v6, %v192_v3  ;;  %p347_p6 = scmp.ne.s32.totalorder %s226_s9, %s346_s10  ;;  %p352_p8 = scmp.lt.s32.totalorder %s346_s10, %s346_s10 }
 0x30e   :  { %v200_v8 = vrot.slane %v199_v7, 1  ;;  %p353_p9 = por %p352_p8, %p351_p7 }
 0x310   :  { %v201_v9 = vadd.f32 %v200_v8, %v199_v7  ;;  %p354_p10 = pnand %p353_p9, %p347_p6 }
 0x312   :  { %v204_v11 = vsel %vm117_vm1, %v201_v9, %v194_v10 }
 0x313   :  { %207 = vst.msk [vmem:[#allocation8] sm:$0x3] %vm206_vm3, %v204_v11 }
 0x314   :  { %357 = shalt.err (!%p354_p10)
}
 0x315   :  { %228 = dma.vmem_to_hbm [thread:$0]  %s226_s9, 32, %s445_s3, [#allocation4]  }
 0x316   :  { %370 = dma.done.wait [#allocation4], 32  }
 0x317   :  { %371 = vsyncadd [#allocation4], 4294967264 }
 0x318   :  { %372 = dma.done.wait [#allocation10], 32  }
 0x319   :  { %373 = vsyncadd [#allocation10], 4294967264 }
 0x31a   :  { %245 = vsyncpa [#allocation3], 1 }
 0x31b   :  { %246 = vsyncpa [#allocation6], 1 }
 0x31c   :  { %247 = vsyncpa [#allocation4], 1 }
 0x31d   :  { %248 = vsyncpa [#allocation10], 1 }

</bundles_post_ra>
